<compile_context>
chip_gen: v7x
topology: tpu7x:2x2x1
jax: 0.10.0
libtpu: 0.0.40
codegen_flags: <defaults>
</compile_context>

<pallas_src>
import functools

import jax
import jax.numpy as jnp
from jax.experimental import pallas as pl
from jax.experimental.pallas import tpu as pltpu

VMEM_SPEC = pl.BlockSpec(memory_space=pltpu.MemorySpace.VMEM)


# ------------------------------ small linear kernel ------------------------------
# Used only for the feature_mapper (outside the encoder stack).

def _linear_kernel(x_ref, w_ref, b_ref, o_ref):
    o_ref[...] = (jnp.dot(x_ref[...], w_ref[...],
                          preferred_element_type=jnp.float32) + b_ref[...])


def linear(x, w, b):
    """x: [M, K] f32, w: [K, N] f32, b: [1, N] f32 -> [M, N] f32."""
    M = x.shape[0]
    N = w.shape[1]
    return pl.pallas_call(
        _linear_kernel,
        out_shape=jax.ShapeDtypeStruct((M, N), jnp.float32),
        in_specs=[VMEM_SPEC, VMEM_SPEC, VMEM_SPEC],
        out_specs=VMEM_SPEC,
    )(x, w, b)


# --------------------------- fused encoder-stack kernel ---------------------------

def _ln(x, g, b, eps=1e-5):
    mu = jnp.mean(x, axis=-1, keepdims=True)
    var = jnp.mean(jnp.square(x - mu), axis=-1, keepdims=True)
    return (x - mu) * jax.lax.rsqrt(var + eps) * g + b


def _encoder_stack_kernel(x0_ref, bias_ref, g0_ref, b0_ref,
                          wqkv_ref, bqkv_ref, wo_ref, bo_ref,
                          ln1g_ref, ln1b_ref, w1_ref, b1_ref, w2_ref, b2_ref,
                          ln2g_ref, ln2b_ref,
                          o_ref,
                          h_scr, qkv_scr, attn_scr,
                          *, B, S, H, Dh, scale):
    D = H * Dh

    # Layer 0: pull embeddings in once, apply the embedding LayerNorm, and make
    # the activations resident in VMEM scratch for the rest of the stack.
    @pl.when(pl.program_id(0) == 0)
    def _():
        h_scr[...] = _ln(x0_ref[...], g0_ref[...], b0_ref[...])

    x = h_scr[...]                                               # [M, D]

    # --- self-attention: fused QKV projection (one MXU pass, N = 3D) ---
    qkv = jnp.dot(x, wqkv_ref[0],
                  preferred_element_type=jnp.float32) + bqkv_ref[0]   # [M, 3D]
    qkv_scr[...] = qkv.reshape(B, S, 3 * D)
    bias = bias_ref[...]                                         # [B, 1, S]

    # Heads + batch unrolled in-kernel (tiny static trip counts); output is
    # assembled lane-dense as [B, S, H*Dh] so the out-projection needs no
    # transpose/reshape through XLA.
    for b in range(B):
        qkv_b = qkv_scr[b]                                       # (S, 3D)
        qb = qkv_b[:, 0 * D:1 * D]
        kb = qkv_b[:, 1 * D:2 * D]
        vb = qkv_b[:, 2 * D:3 * D]
        bias_b = bias[b]                                         # (1, S)
        for h in range(H):
            qh = qb[:, h * Dh:(h + 1) * Dh]
            kh = kb[:, h * Dh:(h + 1) * Dh]
            vh = vb[:, h * Dh:(h + 1) * Dh]
            s = jax.lax.dot_general(qh, kh, (((1,), (1,)), ((), ())),
                                    preferred_element_type=jnp.float32)
            s = s * scale + bias_b
            s = s - jnp.max(s, axis=-1, keepdims=True)
            e = jnp.exp(s)
            p = e * pl.reciprocal(jnp.sum(e, axis=-1, keepdims=True), approx=True)
            attn_scr[b, :, h * Dh:(h + 1) * Dh] = jnp.dot(
                p, vh, preferred_element_type=jnp.float32)

    attn = attn_scr[...].reshape(B * S, D)
    attn = jnp.dot(attn, wo_ref[0],
                   preferred_element_type=jnp.float32) + bo_ref[0]
    x = _ln(x + attn, ln1g_ref[0], ln1b_ref[0])                  # fused residual + LN

    # --- FFN: FC1 -> GELU -> FC2, fused residual + LN ---
    h1 = jnp.dot(x, w1_ref[0], preferred_element_type=jnp.float32) + b1_ref[0]
    # TODO(synk): BART uses exact (erf) GELU; tanh approximation kept for robust lowering.
    h1 = jax.nn.gelu(h1, approximate=True)
    f = jnp.dot(h1, w2_ref[0], preferred_element_type=jnp.float32) + b2_ref[0]
    x = _ln(x + f, ln2g_ref[0], ln2b_ref[0])

    h_scr[...] = x
    o_ref[...] = x


def fused_bart_encoder(params, inputs_embeds, attention_mask, num_heads):
    """Runs the whole encoder stack in a single pallas_call."""
    B, S, D = inputs_embeds.shape
    M = B * S
    L = params["wqkv"].shape[0]
    F = params["w1"].shape[2]
    Dh = D // num_heads

    # HF BartLearnedPositionalEmbedding applies an offset of 2 to position ids.
    pos = params["embed_positions"][2:2 + S]
    h0 = (inputs_embeds + pos[None]).reshape(M, D)
    mask_bias = ((1.0 - attention_mask.astype(jnp.float32)) * -1e9).reshape(B, 1, S)

    const2 = lambda l: (0, 0)
    const3 = lambda l: (0, 0, 0)
    per_layer = lambda l: (l, 0, 0)

    kernel = functools.partial(_encoder_stack_kernel, B=B, S=S, H=num_heads,
                               Dh=Dh, scale=1.0 / (Dh ** 0.5))

    out = pl.pallas_call(
        kernel,
        out_shape=jax.ShapeDtypeStruct((M, D), jnp.float32),
        grid_spec=pltpu.PrefetchScalarGridSpec(
            num_scalar_prefetch=0,
            grid=(L,),
            in_specs=[
                pl.BlockSpec((M, D), const2),               # embeddings (+pos)
                pl.BlockSpec((B, 1, S), const3),            # additive mask bias
                pl.BlockSpec((1, D), const2),               # embed LN gamma
                pl.BlockSpec((1, D), const2),               # embed LN beta
                pl.BlockSpec((1, D, 3 * D), per_layer),     # wqkv (fused)
                pl.BlockSpec((1, 1, 3 * D), per_layer),     # bqkv
                pl.BlockSpec((1, D, D), per_layer),         # wo
                pl.BlockSpec((1, 1, D), per_layer),         # bo
                pl.BlockSpec((1, 1, D), per_layer),         # ln1 gamma
                pl.BlockSpec((1, 1, D), per_layer),         # ln1 beta
                pl.BlockSpec((1, D, F), per_layer),         # w1
                pl.BlockSpec((1, 1, F), per_layer),         # b1
                pl.BlockSpec((1, F, D), per_layer),         # w2
                pl.BlockSpec((1, 1, D), per_layer),         # b2
                pl.BlockSpec((1, 1, D), per_layer),         # ln2 gamma
                pl.BlockSpec((1, 1, D), per_layer),         # ln2 beta
            ],
            out_specs=pl.BlockSpec((M, D), const2),
            scratch_shapes=[
                pltpu.VMEM((M, D), jnp.float32),            # resident activations
                pltpu.VMEM((B, S, 3 * D), jnp.float32),     # per-batch qkv staging
                pltpu.VMEM((B, S, D), jnp.float32),         # lane-dense head merge
            ],
        ),
        compiler_params=pltpu.CompilerParams(
            dimension_semantics=("arbitrary",)),
    )(h0, mask_bias, params["ln_emb_g"], params["ln_emb_b"],
      params["wqkv"], params["bqkv"], params["wo"], params["bo"],
      params["ln1_g"], params["ln1_b"], params["w1"], params["b1"],
      params["w2"], params["b2"], params["ln2_g"], params["ln2_b"])
    return out.reshape(B, S, D)


# ------------------------- BartEncoderWrapper.forward -------------------------

def bart_encoder_wrapper_forward(params, input_ids, attention_mask,
                                 visual_feats=None,
                                 activate_img_features=False,
                                 insert_img_objects=False,
                                 num_heads=4):
    B, T = input_ids.shape
    D = params["embed_tokens"].shape[1]
    tok_emb = params["embed_tokens"][input_ids]           # embedding gather (JAX glue)

    if activate_img_features:
        V = visual_feats.shape[1]
        # feature_mapper Linear (Pallas linear kernel)
        vis = linear(visual_feats.reshape(B * V, -1),
                     params["fm_w"], params["fm_b"]).reshape(B, V, D)
        attention_mask = jnp.concatenate(
            [jnp.ones((B, V + 1), attention_mask.dtype), attention_mask], axis=-1)
        if insert_img_objects:
            attention_mask = jnp.concatenate(
                [jnp.ones((B, 1), attention_mask.dtype), attention_mask], axis=-1)
        # TODO(synk): the custom bart_encoder's crossmod_embeds insertion scheme is
        # not given; we prepend [obj_token] + visual embeds + [sep_token] to match
        # the wrapper's attention-mask arithmetic (1 + V + 1 extra positions).
        parts = [vis, jnp.broadcast_to(params["sep_embed"], (B, 1, D)), tok_emb]
        if insert_img_objects:
            parts = [jnp.broadcast_to(params["obj_embed"], (B, 1, D))] + parts
        inputs_embeds = jnp.concatenate(parts, axis=1)
    else:
        inputs_embeds = tok_emb

    last_hidden = fused_bart_encoder(params, inputs_embeds, attention_mask, num_heads)
    # return_dict=False path: (last_hidden_state, attention_mask)
    return last_hidden, attention_mask


# ------------------------------ parameter init ------------------------------

def init_params(key, vocab=100, max_pos=64, d_model=32, ffn_dim=64,
                num_layers=2, vis_hidden=48):
    keys = iter(jax.random.split(key, 16))

    def nrm(shape, scale=0.02):
        return scale * jax.random.normal(next(keys), shape, jnp.float32)

    L, D, F = num_layers, d_model, ffn_dim
    return {
        "embed_tokens": nrm((vocab, D)),
        "embed_positions": nrm((max_pos + 2, D)),      # +2: HF Bart position offset
        "ln_emb_g": jnp.ones((1, D), jnp.float32),
        "ln_emb_b": jnp.zeros((1, D), jnp.float32),
        "fm_w": nrm((vis_hidden, D)),                  # feature_mapper.weight^T
        "fm_b": jnp.zeros((1, D), jnp.float32),        # feature_mapper.bias
        "obj_embed": nrm((1, D)),
        "sep_embed": nrm((1, D)),
        # Per-layer weights stacked on a leading layer axis (streamed by BlockSpec).
        "wqkv": nrm((L, D, 3 * D)),
        "bqkv": jnp.zeros((L, 1, 3 * D), jnp.float32),
        "wo": nrm((L, D, D)), "bo": jnp.zeros((L, 1, D), jnp.float32),
        "ln1_g": jnp.ones((L, 1, D), jnp.float32),
        "ln1_b": jnp.zeros((L, 1, D), jnp.float32),
        "w1": nrm((L, D, F)), "b1": jnp.zeros((L, 1, F), jnp.float32),
        "w2": nrm((L, F, D)), "b2": jnp.zeros((L, 1, D), jnp.float32),
        "ln2_g": jnp.ones((L, 1, D), jnp.float32),
        "ln2_b": jnp.zeros((L, 1, D), jnp.float32),
    }


# ------------------------------------ main ------------------------------------

if __name__ == "__main__":
    B, T, V = 2, 8, 4
    D_MODEL, FFN_DIM, HEADS, LAYERS = 32, 64, 4, 2
    VIS_HIDDEN, VOCAB = 48, 100

    key = jax.random.PRNGKey(0)
    kp, ki, kv = jax.random.split(key, 3)
    params = init_params(kp, vocab=VOCAB, d_model=D_MODEL, ffn_dim=FFN_DIM,
                         num_layers=LAYERS, vis_hidden=VIS_HIDDEN)

    input_ids = jax.random.randint(ki, (B, T), 0, VOCAB, dtype=jnp.int32)
    attention_mask = jnp.ones((B, T), jnp.int32).at[1, -2:].set(0)  # padding in row 1
    visual_feats = jax.random.normal(kv, (B, V, VIS_HIDDEN), jnp.float32)

    last_hidden, out_mask = bart_encoder_wrapper_forward(
        params, input_ids, attention_mask, visual_feats,
        activate_img_features=True, insert_img_objects=True, num_heads=HEADS)

    jax.block_until_ready((last_hidden, out_mask))
    S_total = 1 + (V + 1) + T
    assert last_hidden.shape == (B, S_total, D_MODEL), last_hidden.shape
    assert out_mask.shape == (B, S_total), out_mask.shape
    assert bool(jnp.all(jnp.isfinite(last_hidden)))
    print("KERNEL_OK")
</pallas_src>

<mosaic_0001>
module attributes {stable_mosaic.version = 11 : i64} {
  func.func @_linear_kernel(%arg0: memref<8x48xf32, #tpu.memory_space<vmem>>, %arg1: memref<48x32xf32, #tpu.memory_space<vmem>>, %arg2: memref<1x32xf32, #tpu.memory_space<vmem>>, %arg3: memref<8x32xf32, #tpu.memory_space<vmem>>) attributes {dimension_semantics = [], scalar_prefetch = 0 : i64, scratch_operands = 0 : i64, tpu.core_type = #tpu.core_type<tc>} {
    %c0 = arith.constant 0 : index
    %c0_0 = arith.constant 0 : index
    %0 = vector.load %arg0[%c0, %c0_0] : memref<8x48xf32, #tpu.memory_space<vmem>>, vector<8x48xf32>
    %c0_1 = arith.constant 0 : index
    %c0_2 = arith.constant 0 : index
    %1 = vector.load %arg1[%c0_1, %c0_2] : memref<48x32xf32, #tpu.memory_space<vmem>>, vector<48x32xf32>
    %cst = arith.constant dense<0.000000e+00> : vector<8x32xf32>
    %2 = tpu.matmul %0, %1, %cst {dimension_numbers = #tpu.dot_dimension_numbers<[1], [0], [0], [1], [0, 0, 1, 1], [], []>} : vector<8x48xf32>, vector<48x32xf32>, vector<8x32xf32> -> vector<8x32xf32>
    %c0_3 = arith.constant 0 : index
    %c0_4 = arith.constant 0 : index
    %3 = vector.load %arg2[%c0_3, %c0_4] : memref<1x32xf32, #tpu.memory_space<vmem>>, vector<1x32xf32>
    %4 = vector.broadcast %3 : vector<1x32xf32> to vector<8x32xf32>
    %5 = arith.addf %2, %4 : vector<8x32xf32>
    %c0_5 = arith.constant 0 : index
    %c0_6 = arith.constant 0 : index
    %6 = vector.load %arg3[%c0_5, %c0_6] : memref<8x32xf32, #tpu.memory_space<vmem>>, vector<8x32xf32>
    tpu.vector_store %arg3[%c0_5, %c0_6], %5 {strides = array<i32>} : memref<8x32xf32, #tpu.memory_space<vmem>>, vector<8x32xf32>,
    return
  }
}

</mosaic_0001>

<bundles_post_ra>
// kernel: tpu_custom_call.1
= control target key start
LH: loop header
LB: loop body
LE: loop exit
PB: predicated region body
PF: predicated region fallthrough
CT: control target
= control target key end

     0   :  { %v180_v3 = vmov 0.0|0.0   ;;  %vm181_vm0 = vmmov 0   ;;  %v182_v6 = vmov 0.0   ;;  %s240_s0 = inlined_call_operand.vmem [shape: f32[8,48], index: 0, kind: input, shape index: {}]   ;;  %s241_s1 = inlined_call_operand.vmem [shape: f32[48,32], index: 1, kind: input, shape index: {}]   ;;  %s242_s2 = inlined_call_operand.vmem [shape: f32[1,32], index: 2, kind: input, shape index: {}]   ;;  %s243_s3 = inlined_call_operand.hbm [shape: f32[8,32], index: 3, kind: output, shape index: {}]  }
   0x1   :  { %v16_v0 = vld [vmem:[%s241_s1] sm:$0xff]  ;;  %v17_v1 = vld [vmem:[%s241_s1 + $0x8] sm:$0xff]  ;;  %v18_v2 = vld [vmem:[%s241_s1 + $0x10] sm:$0xff]  ;;  %143 = vmatprep.subr.bf16.mxu0 %v180_v3  ;;  %140 = vmatprep.mubr.msk.f32.mxu0 %vm181_vm0, %v182_v6 }
   0x2   :  { %v144_v4 = vpack.c.bf16 %v17_v1, %v16_v0  ;;  %v19_v5 = vld [vmem:[%s241_s1 + $0x18] sm:$0xff] }
   0x3   :  { %8 = vsyncpa [#allocation3], 0  ;;  %v147_v7 = vpack.c.bf16 %v19_v5, %v18_v2  ;;  %v20_v8 = vld [vmem:[%s241_s1 + $0x20] sm:$0xff]  ;;  %v21_v9 = vld [vmem:[%s241_s1 + $0x28] sm:$0xff]  ;;  %vm29_vm1 = vcmask 392192   ;;  %s183_s28 = smov [#allocation2]  }
   0x4   :  { %145 = vmatpush3.bf16.msra.mxu0 %v144_v4  ;;  %v150_v10 = vpack.c.bf16 %v21_v9, %v20_v8  ;;  %v15_v11 = vld [vmem:[%s240_s0] sm:$0xff]  ;;  %s111_s29 = sshll.u32 %s183_s28, 4  ;;  %vm103_vm2 = vcmask 261120   ;;  %s112_s29 = int_to_ptr.vmem [resolvable:$true] %s111_s29 }
   0x5   :  { %146 = vmatprep.subr.bf16.mxu0 %v180_v3  ;;  %v119_v12 = vld [vmem:[%s242_s2] ss:$0 sm:$0xff]  ;;  %s156_s1 = scalar_lea.vmem %s112_s29, 128  ;;  %p161_p1 = scmp.lt.s32.totalorder %s112_s29, %s112_s29 }
   0x6   :  { %p157_p0 = scmp.ne.s32.totalorder %s112_s29, %s156_s1  ;;  %p162_p2 = scmp.lt.s32.totalorder %s156_s1, %s156_s1 }
   0x8   :  { %148 = vmatpush3.bf16.msra.mxu0 %v147_v7  ;;  %p163_p3 = por %p162_p2, %p161_p1 }
   0x9   :  { %149 = vmatprep.subr.bf16.mxu0 %v180_v3 }
   0xa   :  { %p164_p4 = pnand %p163_p3, %p157_p0 }
   0xc   :  { %151 = vmatpush3.bf16.msra.mxu0 %v150_v10 }
   0xf   :  { %141 = vmatmul.mubr.msk.f32.vlgmr.msra.gmra.mrb[0].mxu0 %vm29_vm1, %v15_v11 }
  0xe2   :  { %v99_v13 = vpop.f32.mrb[0].mxu0 }
  0xe3   :  { %v100_v14 = vadd.f32 %v119_v12, %v99_v13  ;;  %v142_v15 = vpop.f32.mrb[1].mxu0 }
  0xe5   :  { %104 = vst.msk [vmem:[#allocation2] sm:$0xff] %vm103_vm2, %v100_v14 }
  0xe6   :  { %167 = shalt.err (!%p164_p4)
}
  0xe7   :  { %s168_s4 = scalar_lea.hbm %s243_s3, 128 }
  0xe8   :  { %p169_p5 = scmp.ne.s32.totalorder %s243_s3, %s168_s4  ;;  %p172_p6 = scmp.lt.u32.totalorder %s168_s4, %s243_s3 }
  0xea   :  { %p174_p7 = pnand %p172_p6, %p169_p5 }
  0xec   :  { %177 = shalt.err (!%p174_p7)
}
  0xed   :  { %114 = dma.vmem_to_hbm [thread:$0]  %s112_s29, 128, %s243_s3, [#allocation3]  }
  0xee   :  { %178 = dma.done.wait [#allocation3], 128  }
  0xef   :  { %179 = vsyncadd [#allocation3], 4294967168 }
  0xf0   :  { %118 = vsyncpa [#allocation3], 1 }

</bundles_post_ra>
